<compile_context>
chip_gen: v7x
topology: tpu7x:2x2x1
jax: 0.10.0
libtpu: 0.0.40
codegen_flags: <defaults>
</compile_context>

<pallas_src>
import math

import jax
import jax.numpy as jnp
from jax.experimental import pallas as pl
from jax.experimental.pallas import tpu as pltpu


def _containment_partial_kernel(params_ref, meta_ref, pts_ref, out_ref, acc_ref):
    """One grid step: soft containment of a (block_rows, 128) slab of points.

    params_ref : SMEM f32[8]  = [lambda, lambda*radius, cx, cy, cz, 0, 0, 0]
    meta_ref   : SMEM i32[1]  = [num_valid_points]
    pts_ref    : VMEM f32/bf16[3, block_rows, 128]   (coordinate, row, lane)
    out_ref    : VMEM f32[1, 1, 128]                 per-split partial-sum row
    acc_ref    : VMEM f32[block_rows, 128]           running vector accumulator
    """
    c = pl.program_id(0)                  # split (TensorCore) index
    i = pl.program_id(1)                  # block index within the split
    bps = pl.num_programs(1)              # blocks per split
    block_rows = acc_ref.shape[0]

    @pl.when(i == 0)
    def _init():
        acc_ref[...] = jnp.zeros_like(acc_ref)

    lam = params_ref[0]
    lam_r = params_ref[1]                 # lambda * radius, pre-folded in the wrapper
    cx = params_ref[2]
    cy = params_ref[3]
    cz = params_ref[4]

    # Dense (block_rows, 128) slabs; upcast so bf16 inputs also work.
    dx = pts_ref[0].astype(jnp.float32) - cx
    dy = pts_ref[1].astype(jnp.float32) - cy
    dz = pts_ref[2].astype(jnp.float32) - cz
    dist = jnp.sqrt(dx * dx + dy * dy + dz * dz)
    z = lam_r - lam * dist
    # sigmoid(z) == 0.5 * (1 + tanh(z / 2)) -> one EUP transcendental instead of exp+recip
    cont = 0.5 * (1.0 + jnp.tanh(0.5 * z))

    # Ragged-tail / grid-overrun handling, gated so full blocks pay no mask cost.
    n_valid = meta_ref[0]
    elems_per_block = block_rows * 128
    block_idx = c * bps + i                      # logical (un-clamped) block index
    block_start = block_idx * elems_per_block
    block_end = block_start + elems_per_block

    @pl.when(block_end <= n_valid)
    def _full_block():
        acc_ref[...] += cont                     # pure VPU; reduction deferred

    @pl.when(block_end > n_valid)
    def _ragged_block():
        row = jax.lax.broadcasted_iota(jnp.int32, cont.shape, 0)
        lane = jax.lax.broadcasted_iota(jnp.int32, cont.shape, 1)
        g = block_start + row * 128 + lane       # global element index
        # jnp.where also kills any NaN/Inf garbage from out-of-bounds block rows.
        acc_ref[...] += jnp.where(g < n_valid, cont, 0.0)

    @pl.when(i == bps - 1)
    def _finalize():
        # One cross-sublane reduce per split; only 512 B written back to HBM.
        out_ref[0] = jnp.sum(acc_ref[...], axis=0, keepdims=True)


def _num_tensorcores():
    """2 TensorCores per device on megacore chips (v4/v5p) and v7x; 1 on v5e/v6e."""
    try:
        kind = jax.devices()[0].device_kind.lower()
    except Exception:
        return 1
    if "lite" in kind or "v5e" in kind or "v6e" in kind:
        return 1
    if "v4" in kind or "v5p" in kind or "7" in kind:
        return 2
    return 1


def containment_sum(points_t, num_valid, lambda_, radius, center, *,
                    block_rows=1024, num_split=None):
    """Sum of soft sphere containment over the first `num_valid` points.

    points_t: (3, Ncols) float32/bfloat16, coordinate-major. Ncols should be a
    multiple of 128 (pad once at data-creation time); columns >= num_valid are
    ignored in-kernel, so the pad content is irrelevant.
    """
    three, n_cols = points_t.shape
    assert three == 3
    if n_cols % 128 != 0:
        # Fallback only: this is a full extra HBM pass in front of an HBM-bound
        # kernel. Prefer allocating the point buffer padded to a multiple of 128.
        pad = (-n_cols) % 128
        points_t = jnp.pad(points_t, ((0, 0), (0, pad)))
        n_cols += pad
    rows = n_cols // 128
    pts = points_t.reshape(3, rows, 128)   # free: contiguous split of the minor dim

    if num_split is None:
        num_split = _num_tensorcores()
    if rows <= block_rows:
        block_rows = rows                  # single full-extent block (always legal)
    total_blocks = pl.cdiv(rows, block_rows)
    num_split = max(1, min(num_split, total_blocks))
    bps = pl.cdiv(total_blocks, num_split)

    params = jnp.array(
        [lambda_, lambda_ * radius, center[0], center[1], center[2], 0.0, 0.0, 0.0],
        dtype=jnp.float32)
    meta = jnp.array([num_valid], dtype=jnp.int32)

    def pts_index_map(c, i):
        # Clamp so grid overrun (when total_blocks % num_split != 0) never DMAs out
        # of bounds; those steps are fully masked to zero in the kernel and their
        # DMA is elided because the block index repeats.
        return (0, jnp.minimum(c * bps + i, total_blocks - 1), 0)

    if bps >= 3:
        # Deeper input pipeline: almost no compute to hide DMA behind, so smooth
        # DMA jitter with a 3-deep buffer (footprint stays tiny).
        pts_spec = pl.BlockSpec((3, block_rows, 128), pts_index_map,
                                pipeline_mode=pl.Buffered(3))
    else:
        pts_spec = pl.BlockSpec((3, block_rows, 128), pts_index_map)

    cost = pl.CostEstimate(
        flops=13 * n_cols,
        transcendentals=2 * n_cols,
        bytes_accessed=int(pts.size) * pts.dtype.itemsize + 4 * num_split * 128 + 36,
    )

    partial_sums = pl.pallas_call(
        _containment_partial_kernel,
        out_shape=jax.ShapeDtypeStruct((num_split, 1, 128), jnp.float32),
        grid_spec=pltpu.PrefetchScalarGridSpec(
            num_scalar_prefetch=0,
            grid=(num_split, bps),
            in_specs=[
                pl.BlockSpec(memory_space=pltpu.MemorySpace.SMEM),  # params
                pl.BlockSpec(memory_space=pltpu.MemorySpace.SMEM),  # meta (num_valid)
                pts_spec,
            ],
            out_specs=pl.BlockSpec((1, 1, 128), lambda c, i: (c, 0, 0)),
            scratch_shapes=[pltpu.VMEM((block_rows, 128), jnp.float32)],
        ),
        compiler_params=pltpu.CompilerParams(
            dimension_semantics=("parallel", "arbitrary"),   # split across TCs
        ),
        cost_estimate=cost,
    )(params, meta, pts)

    # (num_split, 1, 128) -> scalar: a few hundred bytes, negligible.
    return jnp.sum(partial_sums)


def primitive_model_forward(points_t, num_points, lambda_, radius, center, **tiling):
    """PrimitiveModel.forward (ContainmentType.DEFAULT, LossType.BEST_MATCH) for a soft sphere.

    points_t  : (3, Ncols) coordinate-major point buffer, Ncols a multiple of 128
                (pad once at data-creation time); only the first `num_points`
                columns are real points.
    num_points: true number of points N used both for masking and the loss.
    """
    num_contained = containment_sum(points_t, num_points, lambda_, radius, center,
                                    **tiling)
    volume = jnp.float32((4.0 / 3.0) * math.pi * radius ** 3)   # sphere volume()
    n_f = jnp.float32(float(num_points))
    jaccard = num_contained / (volume + n_f - num_contained)
    return -jaccard


if __name__ == "__main__":
    # Deterministic synthetic setup. The true point count N is NOT a multiple of
    # 128; the point buffer is allocated padded (to a multiple of 128) once, at
    # data-creation time, and the kernel masks out columns >= N.
    N = 2500
    N_PAD = ((N + 127) // 128) * 128          # 2560
    lambda_ = 4.0
    radius = 1.5
    center = (0.1, -0.2, 0.05)

    key = jax.random.PRNGKey(0)
    # coordinate-major (3, N_PAD); columns >= N hold arbitrary values the kernel ignores
    points_pad = jax.random.normal(key, (3, N_PAD), dtype=jnp.float32)

    # pure-JAX reference of the same math (sigmoid form) on the valid prefix only
    pts_n3 = points_pad[:, :N].T
    c_ref = jnp.asarray(center, jnp.float32)
    d = jnp.sqrt(jnp.sum((pts_n3 - c_ref) ** 2, axis=-1))
    s_ref = jnp.sum(jax.nn.sigmoid(lambda_ * (radius - d)))
    vol = jnp.float32((4.0 / 3.0) * math.pi * radius ** 3)
    loss_ref = -(s_ref / (vol + N - s_ref))

    # 1) default tiling (single full-extent block for this small N)
    loss = jax.block_until_ready(
        primitive_model_forward(points_pad, N, lambda_, radius, center))
    assert jnp.allclose(loss, loss_ref, rtol=1e-4, atol=1e-5), (loss, loss_ref)

    # 2) multi-block + 2-way split: exercises the grid-overrun clamp, the partially
    #    out-of-bounds last block, the ragged-tail mask and the parallel split path
    loss2 = jax.block_until_ready(
        primitive_model_forward(points_pad, N, lambda_, radius, center,
                                block_rows=8, num_split=2))
    assert jnp.allclose(loss2, loss_ref, rtol=1e-4, atol=1e-5), (loss2, loss_ref)

    # 3) multi-block single split: exercises the Buffered(3) input-pipeline path
    loss3 = jax.block_until_ready(
        primitive_model_forward(points_pad, N, lambda_, radius, center,
                                block_rows=8, num_split=1))
    assert jnp.allclose(loss3, loss_ref, rtol=1e-4, atol=1e-5), (loss3, loss_ref)

    print("KERNEL_OK")
</pallas_src>

<mosaic_0001>
module attributes {stable_mosaic.version = 11 : i64} {
  func.func @_containment_partial_kernel(%arg0: i32, %arg1: i32, %arg2: memref<8xf32, #tpu.memory_space<smem>>, %arg3: memref<1xi32, #tpu.memory_space<smem>>, %arg4: memref<3x20x128xf32, #tpu.memory_space<vmem>>, %arg5: memref<1x1x128xf32, #tpu.memory_space<vmem>>, %arg6: memref<20x128xf32, #tpu.memory_space<vmem>>) attributes {dimension_semantics = [#tpu.dimension_semantics<parallel>, #tpu.dimension_semantics<arbitrary>], iteration_bounds = array<i64: 1, 1>, scalar_prefetch = 0 : i64, scratch_operands = 1 : i64, tpu.core_type = #tpu.core_type<tc>, window_params = [{transform_indices = @transform_0, window_bounds = array<i64: 8>}, {transform_indices = @transform_1, window_bounds = array<i64: 1>}, {transform_indices = @transform_2, window_bounds = array<i64: 3, 20, 128>}, {transform_indices = @transform_3, window_bounds = array<i64: 1, 1, 128>}]} {
    %c0_i32 = arith.constant 0 : i32
    %0 = arith.cmpi eq, %arg1, %c0_i32 : i32
    %1 = arith.extui %0 : i1 to i32
    %c0_i32_0 = arith.constant 0 : i32
    %2 = arith.cmpi ne, %1, %c0_i32_0 : i32
    scf.if %2 {
      %cst_18 = arith.constant 0.000000e+00 : f32
      %51 = vector.broadcast %cst_18 : f32 to vector<20x128xf32>
      %c0_19 = arith.constant 0 : index
      %c0_20 = arith.constant 0 : index
      %52 = vector.load %arg6[%c0_19, %c0_20] : memref<20x128xf32, #tpu.memory_space<vmem>>, vector<20x128xf32>
      tpu.vector_store %arg6[%c0_19, %c0_20], %51 {strides = array<i32>} : memref<20x128xf32, #tpu.memory_space<vmem>>, vector<20x128xf32>,
    } else {
    }
    %c0 = arith.constant 0 : index
    %3 = memref.load %arg2[%c0] : memref<8xf32, #tpu.memory_space<smem>>
    %c1 = arith.constant 1 : index
    %4 = memref.load %arg2[%c1] : memref<8xf32, #tpu.memory_space<smem>>
    %c2 = arith.constant 2 : index
    %5 = memref.load %arg2[%c2] : memref<8xf32, #tpu.memory_space<smem>>
    %c3 = arith.constant 3 : index
    %6 = memref.load %arg2[%c3] : memref<8xf32, #tpu.memory_space<smem>>
    %c4 = arith.constant 4 : index
    %7 = memref.load %arg2[%c4] : memref<8xf32, #tpu.memory_space<smem>>
    %c0_1 = arith.constant 0 : index
    %c0_2 = arith.constant 0 : index
    %c0_3 = arith.constant 0 : index
    %8 = vector.load %arg4[%c0_1, %c0_2, %c0_3] : memref<3x20x128xf32, #tpu.memory_space<vmem>>, vector<1x20x128xf32>
    %9 = vector.shape_cast %8 : vector<1x20x128xf32> to vector<20x128xf32>
    %10 = vector.broadcast %5 : f32 to vector<20x128xf32>
    %11 = arith.subf %9, %10 : vector<20x128xf32>
    %c1_4 = arith.constant 1 : index
    %c0_5 = arith.constant 0 : index
    %c0_6 = arith.constant 0 : index
    %12 = vector.load %arg4[%c1_4, %c0_5, %c0_6] : memref<3x20x128xf32, #tpu.memory_space<vmem>>, vector<1x20x128xf32>
    %13 = vector.shape_cast %12 : vector<1x20x128xf32> to vector<20x128xf32>
    %14 = vector.broadcast %6 : f32 to vector<20x128xf32>
    %15 = arith.subf %13, %14 : vector<20x128xf32>
    %c2_7 = arith.constant 2 : index
    %c0_8 = arith.constant 0 : index
    %c0_9 = arith.constant 0 : index
    %16 = vector.load %arg4[%c2_7, %c0_8, %c0_9] : memref<3x20x128xf32, #tpu.memory_space<vmem>>, vector<1x20x128xf32>
    %17 = vector.shape_cast %16 : vector<1x20x128xf32> to vector<20x128xf32>
    %18 = vector.broadcast %7 : f32 to vector<20x128xf32>
    %19 = arith.subf %17, %18 : vector<20x128xf32>
    %20 = arith.mulf %11, %11 : vector<20x128xf32>
    %21 = arith.mulf %15, %15 : vector<20x128xf32>
    %22 = arith.addf %20, %21 : vector<20x128xf32>
    %23 = arith.mulf %19, %19 : vector<20x128xf32>
    %24 = arith.addf %22, %23 : vector<20x128xf32>
    %25 = math.sqrt %24 : vector<20x128xf32>
    %26 = vector.broadcast %3 : f32 to vector<20x128xf32>
    %27 = arith.mulf %26, %25 : vector<20x128xf32>
    %28 = vector.broadcast %4 : f32 to vector<20x128xf32>
    %29 = arith.subf %28, %27 : vector<20x128xf32>
    %cst = arith.constant 5.000000e-01 : f32
    %30 = vector.broadcast %cst : f32 to vector<20x128xf32>
    %31 = arith.mulf %30, %29 : vector<20x128xf32>
    %32 = math.tanh %31 : vector<20x128xf32>
    %cst_10 = arith.constant 1.000000e+00 : f32
    %33 = vector.broadcast %cst_10 : f32 to vector<20x128xf32>
    %34 = arith.addf %33, %32 : vector<20x128xf32>
    %cst_11 = arith.constant 5.000000e-01 : f32
    %35 = vector.broadcast %cst_11 : f32 to vector<20x128xf32>
    %36 = arith.mulf %35, %34 : vector<20x128xf32>
    %c0_12 = arith.constant 0 : index
    %37 = memref.load %arg3[%c0_12] : memref<1xi32, #tpu.memory_space<smem>>
    %c1_i32 = arith.constant 1 : i32
    %38 = arith.muli %arg0, %c1_i32 : i32
    %39 = arith.addi %38, %arg1 : i32
    %c2560_i32 = arith.constant 2560 : i32
    %40 = arith.muli %39, %c2560_i32 : i32
    %c2560_i32_13 = arith.constant 2560 : i32
    %41 = arith.addi %40, %c2560_i32_13 : i32
    %42 = arith.cmpi sle, %41, %37 : i32
    %43 = arith.extui %42 : i1 to i32
    %c0_i32_14 = arith.constant 0 : i32
    %44 = arith.cmpi ne, %43, %c0_i32_14 : i32
    scf.if %44 {
      %c0_18 = arith.constant 0 : index
      %c0_19 = arith.constant 0 : index
      %51 = vector.load %arg6[%c0_18, %c0_19] : memref<20x128xf32, #tpu.memory_space<vmem>>, vector<20x128xf32>
      %52 = arith.addf %51, %36 : vector<20x128xf32>
      %c0_20 = arith.constant 0 : index
      %c0_21 = arith.constant 0 : index
      %53 = vector.load %arg6[%c0_20, %c0_21] : memref<20x128xf32, #tpu.memory_space<vmem>>, vector<20x128xf32>
      tpu.vector_store %arg6[%c0_20, %c0_21], %52 {strides = array<i32>} : memref<20x128xf32, #tpu.memory_space<vmem>>, vector<20x128xf32>,
    } else {
    }
    %45 = arith.cmpi sgt, %41, %37 : i32
    %46 = arith.extui %45 : i1 to i32
    %c0_i32_15 = arith.constant 0 : i32
    %47 = arith.cmpi ne, %46, %c0_i32_15 : i32
    scf.if %47 {
      %51 = tpu.iota {dimensions = array<i32: 0>} : vector<20x128xi32>
      %52 = tpu.iota {dimensions = array<i32: 1>} : vector<20x128xi32>
      %c128_i32 = arith.constant 128 : i32
      %53 = vector.broadcast %c128_i32 : i32 to vector<20x128xi32>
      %54 = arith.muli %51, %53 : vector<20x128xi32>
      %55 = vector.broadcast %40 : i32 to vector<20x128xi32>
      %56 = arith.addi %55, %54 : vector<20x128xi32>
      %57 = arith.addi %56, %52 : vector<20x128xi32>
      %c0_18 = arith.constant 0 : index
      %c0_19 = arith.constant 0 : index
      %58 = vector.load %arg6[%c0_18, %c0_19] : memref<20x128xf32, #tpu.memory_space<vmem>>, vector<20x128xf32>
      %59 = vector.broadcast %37 : i32 to vector<20x128xi32>
      %60 = arith.cmpi slt, %57, %59 : vector<20x128xi32>
      %cst_20 = arith.constant 0.000000e+00 : f32
      %61 = vector.broadcast %cst_20 : f32 to vector<20x128xf32>
      %62 = arith.select %60, %36, %61 : vector<20x128xi1>, vector<20x128xf32>
      %63 = arith.addf %58, %62 : vector<20x128xf32>
      %c0_21 = arith.constant 0 : index
      %c0_22 = arith.constant 0 : index
      %64 = vector.load %arg6[%c0_21, %c0_22] : memref<20x128xf32, #tpu.memory_space<vmem>>, vector<20x128xf32>
      tpu.vector_store %arg6[%c0_21, %c0_22], %63 {strides = array<i32>} : memref<20x128xf32, #tpu.memory_space<vmem>>, vector<20x128xf32>,
    } else {
    }
    %c0_i32_16 = arith.constant 0 : i32
    %48 = arith.cmpi eq, %arg1, %c0_i32_16 : i32
    %49 = arith.extui %48 : i1 to i32
    %c0_i32_17 = arith.constant 0 : i32
    %50 = arith.cmpi ne, %49, %c0_i32_17 : i32
    scf.if %50 {
      %c0_18 = arith.constant 0 : index
      %c0_19 = arith.constant 0 : index
      %51 = vector.load %arg6[%c0_18, %c0_19] : memref<20x128xf32, #tpu.memory_space<vmem>>, vector<20x128xf32>
      %cst_20 = arith.constant dense<0.000000e+00> : vector<128xf32>
      %52 = vector.multi_reduction <add>, %51, %cst_20 [0] : vector<20x128xf32> to vector<128xf32>
      %53 = vector.shape_cast %52 : vector<128xf32> to vector<1x128xf32>
      %c0_21 = arith.constant 0 : index
      %c0_22 = arith.constant 0 : index
      %c0_23 = arith.constant 0 : index
      %54 = vector.load %arg5[%c0_21, %c0_22, %c0_23] : memref<1x1x128xf32, #tpu.memory_space<vmem>>, vector<1x1x128xf32>
      %55 = vector.shape_cast %54 : vector<1x1x128xf32> to vector<1x128xf32>
      %56 = vector.shape_cast %53 : vector<1x128xf32> to vector<1x1x128xf32>
      tpu.vector_store %arg5[%c0_21, %c0_22, %c0_23], %56 {strides = array<i32>} : memref<1x1x128xf32, #tpu.memory_space<vmem>>, vector<1x1x128xf32>,
    } else {
    }
    return
  }
  func.func @transform_0(%arg0: i32, %arg1: i32) -> i32 {
    %c0_i32 = arith.constant 0 : i32
    %c0_i32_0 = arith.constant 0 : i32
    return %c0_i32 : i32
  }
  func.func @transform_1(%arg0: i32, %arg1: i32) -> i32 {
    %c0_i32 = arith.constant 0 : i32
    %c0_i32_0 = arith.constant 0 : i32
    return %c0_i32 : i32
  }
  func.func @transform_2(%arg0: i32, %arg1: i32) -> (i32, i32, i32) {
    %c1_i32 = arith.constant 1 : i32
    %0 = arith.muli %arg0, %c1_i32 : i32
    %1 = arith.addi %0, %arg1 : i32
    %c0_i32 = arith.constant 0 : i32
    %2 = arith.minsi %1, %c0_i32 : i32
    %c0_i32_0 = arith.constant 0 : i32
    %c0_i32_1 = arith.constant 0 : i32
    %c0_i32_2 = arith.constant 0 : i32
    return %c0_i32_0, %2, %c0_i32_1 : i32, i32, i32
  }
  func.func @transform_3(%arg0: i32, %arg1: i32) -> (i32, i32, i32) {
    %c0_i32 = arith.constant 0 : i32
    %c0_i32_0 = arith.constant 0 : i32
    %c0_i32_1 = arith.constant 0 : i32
    return %arg0, %c0_i32, %c0_i32_0 : i32, i32, i32
  }
}

</mosaic_0001>

<bundles_post_ra>
// kernel: tpu_custom_call.1
= control target key start
LH: loop header
LB: loop body
LE: loop exit
PB: predicated region body
PF: predicated region fallthrough
CT: control target
= control target key end

     0   :  { %9 = vsyncpa [#allocation7], 0  ;;  %s382_s0 = inlined_call_operand.vmem [shape: f32[8], index: 0, kind: input, shape index: {}]   ;;  %s383_s1 = inlined_call_operand.<no memory space> [shape: s32[1], index: 1, kind: input, shape index: {}]   ;;  %s384_s2 = inlined_call_operand.hbm [shape: f32[3,20,128], index: 2, kind: input, shape index: {}]   ;;  %s385_s3 = inlined_call_operand.hbm [shape: f32[1,1,128], index: 3, kind: output, shape index: {}]  }
   0x1   :  { %10 = vsyncpa [#allocation5], 0 }
   0x2   :  { %11 = vsyncpa [#allocation6], 0  ;;  %s18_s14 = sshll.u32 %s382_s0, 4  ;;  %s19_s14 = int_to_ptr.vmem [resolvable:$true] %s18_s14 }
   0x3   :  { %s258_s15 = scalar_lea.vmem %s19_s14, 16  ;;  %p263_p1 = scmp.lt.s32.totalorder %s19_s14, %s19_s14 }
   0x4   :  { %p259_p0 = scmp.ne.s32.totalorder %s19_s14, %s258_s15  ;;  %p264_p2 = scmp.lt.s32.totalorder %s258_s15, %s258_s15 }
   0x6   :  { %p265_p3 = por %p264_p2, %p263_p1 }
   0x8   :  { %p266_p4 = pnand %p265_p3, %p259_p0 }
   0xa   :  { %269 = shalt.err (!%p266_p4)
}
   0xb   :  { %s320_s16 = smov [#allocation4]   ;;  %s321_s17 = smov [#allocation8]  }
   0xc   :  { %21 = dma.vmem_to_smem %s19_s14, 16, %s320_s16, [#allocation7]  }
   0xd   :  { %s35_s18 = sshll.u32 %s321_s17, 4  ;;  %s270_s21 = scalar_lea.hbm %s384_s2, 1152  ;;  %s36_s18 = int_to_ptr.vmem [resolvable:$true] %s35_s18 }
   0xe   :  { %p271_p5 = scmp.ne.s32.totalorder %s384_s2, %s270_s21  ;;  %p274_p6 = scmp.lt.u32.totalorder %s270_s21, %s384_s2 }
  0x10   :  { %p276_p7 = pnand %p274_p6, %p271_p5 }
  0x12   :  { %279 = shalt.err (!%p276_p7)
}
  0x13   :  { %s280_s25 = scalar_lea.vmem %s36_s18, 1152  ;;  %p285_p9 = scmp.lt.s32.totalorder %s36_s18, %s36_s18 }
  0x14   :  { %p281_p8 = scmp.ne.s32.totalorder %s36_s18, %s280_s25  ;;  %p286_p10 = scmp.lt.s32.totalorder %s280_s25, %s280_s25 }
  0x16   :  { %p287_p11 = por %p286_p10, %p285_p9 }
  0x18   :  { %p288_p12 = pnand %p287_p11, %p281_p8 }
  0x1a   :  { %291 = shalt.err (!%p288_p12)
}
  0x1b   :  { %s322_s26 = smov 128   ;;  %s323_s27 = smov 8  }
  0x1c   :  { %41 = dma.hbm_to_vmem [thread:$0]  %s384_s2, 1152, %s36_s18, [#allocation5], %s322_s26, %s322_s26, %s323_s27  }
  0x1d   :  { %314 = dma.done.wait [#allocation7], 16  }
  0x1e   :  { %315 = vsyncadd [#allocation7], 4294967280 }
  0x1f   :  { %316 = dma.done.wait [#allocation5], 1152  }
  0x20   :  { %317 = vsyncadd [#allocation5], 4294966144 }
  0x21   :  { %48 = sfence }
  0x22   :  { %v324_v0 = vmov 0.0   ;;  %s233_s30 = sld [smem:[#allocation4 + $0x2]]  ;;  %s234_s4 = sld [smem:[#allocation4 + $0x3]]  ;;  %v65_v1 = vld [vmem:[#allocation8] sm:$0xff]  ;;  %v66_v2 = vld [vmem:[#allocation8 + $0x8] sm:$0xff]  ;;  %v73_v4 = vld [vmem:[#allocation8 + $0x18] sm:$0xff] }
  0x23   :  { %57 = vst [vmem:[#allocation2] sm:$0xff] %v324_v0  ;;  %58 = vst [vmem:[#allocation2 + $0x8] sm:$0xff] %v324_v0  ;;  %s235_s5 = sld [smem:[#allocation4 + $0x4]]  ;;  %v67_v3 = vld [vmem:[#allocation8 + $0x10] sm:$0xf]  ;;  %v74_v5 = vld [vmem:[#allocation8 + $0x20] sm:$0xff] }
  0x24   :  { %59 = vst [vmem:[#allocation2 + $0x10] sm:$0xf] %v324_v0  ;;  %v75_v6 = vld [vmem:[#allocation8 + $0x28] sm:$0xf]  ;;  %v81_v9 = vld [vmem:[#allocation8 + $0x30] sm:$0xff]  ;;  %v82_v10 = vld [vmem:[#allocation8 + $0x38] sm:$0xff] }
  0x25   :  { %v83_v11 = vld [vmem:[#allocation8 + $0x40] sm:$0xf]  ;;  %s60_s2 = sld [smem:[#allocation4]]  ;;  %s232_s6 = sld [smem:[#allocation4 + $0x1]] }
  0x26   :  { %p237_p13 = scmp.lt.s32.totalorder %s383_s1, 2560 }
  0x28   :  { %v68_v7 = vstv %s233_s30  ;;  %v76_v8 = vstv %s234_s4 }
  0x29   :  { %v69_v12 = vsub.f32 %v65_v1, %v68_v7  ;;  %v70_v13 = vsub.f32 %v66_v2, %v68_v7  ;;  %v71_v14 = vsub.f32 %v67_v3, %v68_v7  ;;  %v77_v15 = vsub.f32 %v73_v4, %v76_v8 }
  0x2a   :  { %v78_v16 = vsub.f32 %v74_v5, %v76_v8  ;;  %v79_v17 = vsub.f32 %v75_v6, %v76_v8  ;;  %v84_v18 = vstv %s235_s5  ;;  %v152_v8 = vld [vmem:[#allocation2] sm:$0xff] (!%p237_p13) }
  0x2b   :  { %v85_v19 = vsub.f32 %v81_v9, %v84_v18  ;;  %v86_v20 = vsub.f32 %v82_v10, %v84_v18  ;;  %v87_v21 = vsub.f32 %v83_v11, %v84_v18  ;;  %v88_v22 = vmul.f32 %v69_v12, %v69_v12  ;;  %v153_v9 = vld [vmem:[#allocation2 + $0x8] sm:$0xff] (!%p237_p13)  ;;  %v154_v10 = vld [vmem:[#allocation2 + $0x10] sm:$0xf] (!%p237_p13) }
  0x2c   :  { %v89_v23 = vmul.f32 %v70_v13, %v70_v13  ;;  %v90_v24 = vmul.f32 %v71_v14, %v71_v14  ;;  %v91_v25 = vmul.f32 %v77_v15, %v77_v15  ;;  %v92_v26 = vmul.f32 %v78_v16, %v78_v16 }
  0x2d   :  { %v93_v27 = vmul.f32 %v79_v17, %v79_v17  ;;  %v97_v28 = vmul.f32 %v85_v19, %v85_v19  ;;  %v98_v29 = vmul.f32 %v86_v20, %v86_v20  ;;  %v99_v30 = vmul.f32 %v87_v21, %v87_v21 }
  0x2e   :  { %v94_v31 = vadd.f32 %v91_v25, %v88_v22  ;;  %v95_v32 = vadd.f32 %v92_v26, %v89_v23  ;;  %v124_v39 = vstv %s60_s2  ;;  %v128_v50 = vstv %s232_s6 }
  0x2f   :  { %v96_v33 = vadd.f32 %v93_v27, %v90_v24 }
  0x30   :  { %v100_v34 = vadd.f32 %v97_v28, %v94_v31  ;;  %v101_v35 = vadd.f32 %v98_v29, %v95_v32 }
  0x31   :  { %v102_v36 = vadd.f32 %v99_v30, %v96_v33 }
  0x32   :  { %246 = vrsqrt.f32 %v100_v34  ;;  %vm105_vm0 = vcmp.eq.f32.partialorder %v100_v34, inf  ;;  %v108_v38 = vand.u32 2147483648, %v100_v34  ;;  %vm107_vm1 = vcmp.eq.f32.partialorder %v100_v34, 0.0 }
  0x33   :  { %248 = vrsqrt.f32 %v101_v35  ;;  %vm112_vm2 = vcmp.eq.f32.partialorder %v101_v35, inf  ;;  %v115_v42 = vand.u32 2147483648, %v101_v35  ;;  %vm114_vm3 = vcmp.eq.f32.partialorder %v101_v35, 0.0 }
  0x34   :  { %250 = vrsqrt.f32 %v102_v36  ;;  %vm119_vm4 = vcmp.eq.f32.partialorder %v102_v36, inf  ;;  %v122_v45 = vand.u32 2147483648, %v102_v36  ;;  %vm121_vm5 = vcmp.eq.f32.partialorder %v102_v36, 0.0 }
  0x3c   :  { %v247_v37 = vpop.eup %246 }
  0x3d   :  { %v249_v40 = vpop.eup %248  ;;  %v104_v41 = vmul.f32 %v247_v37, %v100_v34 }
  0x3e   :  { %v251_v43 = vpop.eup %250  ;;  %v111_v44 = vmul.f32 %v249_v40, %v101_v35 }
  0x3f   :  { %v106_v46 = vsel %vm105_vm0, %v100_v34, %v104_v41  ;;  %v118_v47 = vmul.f32 %v251_v43, %v102_v36 }
  0x40   :  { %v109_v48 = vsel %vm107_vm1, %v108_v38, %v106_v46  ;;  %v113_v49 = vsel %vm112_vm2, %v101_v35, %v111_v44 }
  0x41   :  { %v116_v51 = vsel %vm114_vm3, %v115_v42, %v113_v49  ;;  %v120_v52 = vsel %vm119_vm4, %v102_v36, %v118_v47  ;;  %v125_v53 = vmul.f32 %v124_v39, %v109_v48 }
  0x42   :  { %v123_v54 = vsel %vm121_vm5, %v122_v45, %v120_v52  ;;  %v126_v55 = vmul.f32 %v124_v39, %v116_v51 }
  0x43   :  { %v127_v56 = vmul.f32 %v124_v39, %v123_v54  ;;  %v129_v57 = vsub.f32 %v128_v50, %v125_v53 }
  0x44   :  { %v130_v58 = vsub.f32 %v128_v50, %v126_v55 }
  0x45   :  { %v131_v59 = vsub.f32 %v128_v50, %v127_v56  ;;  %v132_v60 = vmul.f32 0.5, %v129_v57 }
  0x46   :  { %v133_v61 = vmul.f32 0.5, %v130_v58 }
  0x47   :  { %v134_v62 = vmul.f32 0.5, %v131_v59  ;;  %252 = vtanh.f32 %v132_v60 }
  0x48   :  { %254 = vtanh.f32 %v133_v61 }
  0x49   :  { %256 = vtanh.f32 %v134_v62 }
  0x50   :  { %151 = sbr.rel (%p237_p13) target bundleno = 91 (0x5b), region = 29 }
  0x51   :  { %v253_v63 = vpop.eup %252 }
  0x52   :  { %v255_v0 = vpop.eup %254  ;;  %v138_v1 = vadd.f32 1.0, %v253_v63 }
  0x53   :  { %v257_v2 = vpop.eup %256  ;;  %v139_v3 = vadd.f32 1.0, %v255_v0 }
  0x54   :  { %v140_v4 = vadd.f32 1.0, %v257_v2  ;;  %v141_v5 = vmul.f32 0.5, %v138_v1 }
  0x55   :  { %v142_v6 = vmul.f32 0.5, %v139_v3 }
  0x56   :  { %v143_v7 = vmul.f32 0.5, %v140_v4  ;;  %v155_v11 = vadd.f32 (!%p237_p13), %v152_v8, %v141_v5 }
  0x57   :  { %v156_v12 = vadd.f32 %v153_v9, %v142_v6 }
  0x58   :  { %v157_v13 = vadd.f32 %v154_v10, %v143_v7  ;;  %158 = vst [vmem:[#allocation2] sm:$0xff] %v155_v11 }
  0x59   :  { %159 = vst [vmem:[#allocation2 + $0x8] sm:$0xff] %v156_v12 }
  0x5a   :  { %160 = vst [vmem:[#allocation2 + $0x10] sm:$0xf] %v157_v13 }
  0x5b PF:  { %p239_p0 = scmp.ge.s32.totalorder %s383_s1, 2560 }
  0x5c   :  { %v165_v14 = vlaneseq (!%p239_p0)  ;;  %v184_v20 = vstv (!%p239_p0), %s383_s1 }
  0x5d   :  { %164 = sbr.rel (%p239_p0) target bundleno = 107 (0x6b), region = 33 }
  0x5e   :  { %v166_v15 = vshrl.u32 (!%p239_p0), %v165_v14, 7  ;;  %v170_v16 = vand.u32 (!%p239_p0), 127, %v165_v14 }
  0x5f   :  { %v181_v24 = vld [vmem:[#allocation2] sm:$0xff] (!%p239_p0) }
  0x60   :  { %v171_v17 = vmul.u32 (!%p239_p0), 128, %v166_v15  ;;  %v167_v18 = vadd.s32 (!%p239_p0), 8, %v166_v15  ;;  %v168_v19 = vadd.s32 (!%p239_p0), 16, %v166_v15  ;;  %v182_v28 = vld [vmem:[#allocation2 + $0x8] sm:$0xff] (!%p239_p0) }
  0x61   :  { %v183_v29 = vld [vmem:[#allocation2 + $0x10] sm:$0xf] (!%p239_p0) }
  0x62   :  { %v178_v21 = vadd.s32 (!%p239_p0), %v171_v17, %v170_v16  ;;  %v172_v22 = vmul.u32 (!%p239_p0), 128, %v167_v18  ;;  %v173_v23 = vmul.u32 (!%p239_p0), 128, %v168_v19 }
  0x64   :  { %vm185_vm6 = vcmp.lt.s32.totalorder %v178_v21, %v184_v20  ;;  %v179_v25 = vadd.s32 %v172_v22, %v170_v16  ;;  %v180_v26 = vadd.s32 %v173_v23, %v170_v16 }
  0x65   :  { %v188_v27 = vsel %vm185_vm6, %v141_v5, 0.0 }
  0x66   :  { %v191_v30 = vadd.f32 %v188_v27, %v181_v24  ;;  %vm186_vm7 = vcmp.lt.s32.totalorder %v179_v25, %v184_v20  ;;  %vm187_vm8 = vcmp.lt.s32.totalorder %v180_v26, %v184_v20 }
  0x67   :  { %v189_v31 = vsel %vm186_vm7, %v142_v6, 0.0  ;;  %v190_v32 = vsel %vm187_vm8, %v143_v7, 0.0 }
  0x68   :  { %194 = vst [vmem:[#allocation2] sm:$0xff] %v191_v30  ;;  %v192_v33 = vadd.f32 %v189_v31, %v182_v28  ;;  %v193_v34 = vadd.f32 %v190_v32, %v183_v29 }
  0x6a   :  { %195 = vst [vmem:[#allocation2 + $0x8] sm:$0xff] %v192_v33  ;;  %196 = vst [vmem:[#allocation2 + $0x10] sm:$0xf] %v193_v34 }
  0x6b PF:  { %vm204_vm9 = vcmask 1043456   ;;  %s325_s1 = smov [#allocation9]  }
  0x6c   :  { %s220_s13 = sshll.u32 %s325_s1, 4  ;;  %s221_s13 = int_to_ptr.vmem [resolvable:$true] %s220_s13 }
  0x6d   :  { %s292_s14 = scalar_lea.vmem %s221_s13, 16  ;;  %s296_s15 = scalar_lea.vmem %s221_s13, 32 }
  0x6e   :  { %p293_p1 = scmp.ne.s32.totalorder %s221_s13, %s292_s14  ;;  %p297_p2 = scmp.lt.s32.totalorder %s221_s13, %s221_s13 }
  0x6f   :  { %v200_v35 = vld [vmem:[#allocation2] sm:$0xff]  ;;  %p298_p3 = scmp.lt.s32.totalorder %s296_s15, %s292_s14 }
  0x71   :  { %v201_v36 = vld [vmem:[#allocation2 + $0x8] sm:$0xff]  ;;  %v202_v37 = vld [vmem:[#allocation2 + $0x10] sm:$0xf]  ;;  %p299_p4 = por %p298_p3, %p297_p2 }
  0x72   :  { %v203_v38 = vadd.f32 %v201_v36, %v200_v35  ;;  %v205_v39 = vsel %vm204_vm9, %v202_v37, 0.0 }
  0x73   :  { %p300_p5 = pnand %p299_p4, %p293_p1 }
  0x74   :  { %v206_v40 = vadd.f32 %v205_v39, %v203_v38 }
  0x76   :  { %v207_v41 = vrot.slane %v206_v40, 4 }
  0x78   :  { %v208_v42 = vadd.f32 %v207_v41, %v206_v40 }
  0x7a   :  { %v209_v43 = vrot.slane %v208_v42, 2 }
  0x7c   :  { %v210_v44 = vadd.f32 %v209_v43, %v208_v42 }
  0x7e   :  { %v211_v45 = vrot.slane %v210_v44, 1 }
  0x80   :  { %v212_v46 = vadd.f32 %v211_v45, %v210_v44 }
  0x82   :  { %213 = vst [vmem:[#allocation9] sm:$0x1] %v212_v46 }
  0x83   :  { %303 = shalt.err (!%p300_p5)
}
  0x84   :  { %s304_s18 = scalar_lea.hbm %s385_s3, 16 }
  0x85   :  { %p305_p6 = scmp.ne.s32.totalorder %s385_s3, %s304_s18  ;;  %p308_p7 = scmp.lt.u32.totalorder %s304_s18, %s385_s3 }
  0x87   :  { %p310_p8 = pnand %p308_p7, %p305_p6 }
  0x89   :  { %313 = shalt.err (!%p310_p8)
}
  0x8a   :  { %223 = dma.vmem_to_hbm [thread:$0]  %s221_s13, 16, %s385_s3, [#allocation6]  }
  0x8b   :  { %318 = dma.done.wait [#allocation6], 16  }
  0x8c   :  { %319 = vsyncadd [#allocation6], 4294967280 }
  0x8d   :  { %227 = vsyncpa [#allocation5], 1 }
  0x8e   :  { %228 = vsyncpa [#allocation6], 1 }
  0x8f   :  { %229 = vsyncpa [#allocation7], 1 }

</bundles_post_ra>
